<compile_context>
chip_gen: v6e
topology: v6e:2x2x1
jax: 0.10.0
libtpu: 0.0.40
codegen_flags: <defaults>
</compile_context>

<pallas_src>
import math

import jax
import jax.numpy as jnp
import numpy as np
from jax import lax
from jax.experimental import pallas as pl
from jax.experimental.pallas import tpu as pltpu


def _round_up(x, m):
    return ((x + m - 1) // m) * m


def _cdiv(a, b):
    return (a + b - 1) // b


def _pick_tile(dim, target, align):
    """Largest tile <= target (multiple of `align`) that, when possible, exactly
    divides round_up(dim, align) -- avoiding any padding beyond bare alignment."""
    dp = _round_up(dim, align)
    t = min(_round_up(target, align), dp)
    if dp % t == 0:
        return t
    c = t - align
    while c >= max(align, t // 2):
        if dp % c == 0:
            return c
        c -= align
    return t  # no divisor in [t/2, t]; accept padding up to a multiple of t


def _make_kernel(has_bias, use_scratch, compute_dtype):
    """Build a matmul(+bias) kernel variant.

    x_ref : (tm, tk)  input tile
    w_ref : (tn, tk)  weight tile in nn.Linear (out, in) layout; contracted on its
                      last dim (transposed-RHS matmul -- native MXU form).
    b_ref : (1, tn)   f32 bias tile (only if has_bias)
    o_ref : (tm, tn)  output tile, resident across the K (reduction) grid axis
    acc   : (tm, tn)  f32 scratch (only for non-f32 outputs); else o_ref is the acc
    """
    # TODO(synk): verify in the bundle dump that this lowers without a per-step
    # vxpose of the weight tile; if one appears, pre-transpose the (static) weight
    # to (K, N) once outside the hot path and contract with (((1,),(0,)),((),())).
    def body(x_ref, w_ref, b_ref, o_ref, acc_ref):
        k = pl.program_id(2)

        @pl.when(k == 0)
        def _():
            acc_ref[...] = jnp.zeros_like(acc_ref)

        x = x_ref[...]
        w = w_ref[...]
        if compute_dtype is not None:
            x = x.astype(compute_dtype)
            w = w.astype(compute_dtype)

        acc_ref[...] += lax.dot_general(
            x, w,
            dimension_numbers=(((1,), (1,)), ((), ())),
            preferred_element_type=jnp.float32,
        )

        if has_bias or use_scratch:
            # Bias added exactly once after the full contraction
            # (== "after all-reduce" in the original module).
            @pl.when(k == pl.num_programs(2) - 1)
            def _():
                r = acc_ref[...]
                if has_bias:
                    r = r + b_ref[...]
                o_ref[...] = r.astype(o_ref.dtype)

    if has_bias and use_scratch:
        def kernel(x_ref, w_ref, b_ref, o_ref, acc_ref):
            body(x_ref, w_ref, b_ref, o_ref, acc_ref)
    elif has_bias:
        def kernel(x_ref, w_ref, b_ref, o_ref):
            body(x_ref, w_ref, b_ref, o_ref, o_ref)
    elif use_scratch:
        def kernel(x_ref, w_ref, o_ref, acc_ref):
            body(x_ref, w_ref, None, o_ref, acc_ref)
    else:
        def kernel(x_ref, w_ref, o_ref):
            body(x_ref, w_ref, None, o_ref, o_ref)
    return kernel


def row_parallel_linear(x, weight, bias=None, *, world_size=2,
                        tm=512, tn=512, tk=None, compute_dtype=None,
                        weight_buffers=2):
    """Emulated RowParallelLinear forward (input_is_parallel=False path).

    x      : (..., in_features)
    weight : (out_features, in_features)  -- full (unsharded) nn.Linear weight
    bias   : (out_features,) or None
    world_size only participates via the divisibility check; the per-rank partial
    sums + all-reduce are subsumed by the K-axis accumulation.
    compute_dtype: optional in-kernel cast (e.g. jnp.bfloat16) for MXU throughput
    on f32 models; accumulation stays f32.  Off by default (exact f32 numerics).
    """
    *lead, K = x.shape
    N, Kw = weight.shape
    assert K == Kw, "in_features mismatch"
    assert K % world_size == 0, "ensure_divisibility(in_features, world_size)"
    M = int(math.prod(lead)) if lead else 1
    out_dtype = x.dtype

    x_item = jnp.dtype(x.dtype).itemsize
    w_item = jnp.dtype(weight.dtype).itemsize
    out_item = jnp.dtype(out_dtype).itemsize
    sublane = {4: 8, 2: 16, 1: 32}.get(x_item, 8)

    if tk is None:
        tk = 1024 if max(x_item, w_item) <= 2 else 512

    # Big-GEMM auto-grow: 1024x1024 output tile (AI ~512 flop/byte) when there are
    # still plenty of output tiles to balance across cores.
    if M >= 4096 and N >= 4096:
        tm = max(tm, 1024)
        tn = max(tn, 1024)

    # Small-M (decode / GEMV-like): the kernel is a pure weight stream -- round tm
    # to the packed sublane tile and widen tn/tk for full-rate DMA + lane-dense
    # output stores.
    if M <= 64:
        tm = _round_up(M, sublane)
        tn = max(tn, 1024)
        tk = max(tk, 2048 if max(x_item, w_item) <= 2 else 1024)

    tm = _pick_tile(M, tm, sublane)
    tn = _pick_tile(N, tn, 128)
    tk = _pick_tile(K, tk, 128)

    has_bias = bias is not None
    use_scratch = (out_dtype != jnp.float32)

    def vmem_est(tm_, tn_, tk_):
        b = 2 * tm_ * tk_ * x_item                 # double-buffered X block
        b += weight_buffers * tn_ * tk_ * w_item   # buffered W block
        b += 2 * tm_ * tn_ * out_item              # resident/double-buffered out
        if use_scratch:
            b += tm_ * tn_ * 4
        if has_bias:
            b += 2 * tn_ * 4
        return b

    # Keep the working set comfortably inside v7x's 64 MiB/TC (and everyone else).
    VMEM_BUDGET = 28 << 20
    while vmem_est(tm, tn, tk) > VMEM_BUDGET:
        if tk > 256:
            tk = max(128, _round_up(tk // 2, 128))
        elif tn > 256:
            tn = max(128, _round_up(tn // 2, 128))
        elif tm > max(sublane, 128):
            tm = max(sublane, _round_up(tm // 2, sublane))
        else:
            break

    # Megacore guardrail: ensure >=2 output tiles so the second TensorCore isn't
    # idle under dimension_semantics=("parallel","parallel","arbitrary").
    while _cdiv(M, tm) * _cdiv(N, tn) < 2 and max(tm, tn) > 256:
        if tm >= tn and tm > 256:
            tm = max(256, _round_up(tm // 2, sublane))
        elif tn > 256:
            tn = max(256, _round_up(tn // 2, 128))
        else:
            break

    Mp, Np, Kp = _round_up(M, tm), _round_up(N, tn), _round_up(K, tk)

    # Pad only when genuinely unaligned (zero K-padding contributes 0 to the sums).
    x2 = x.reshape(M, K)
    if (Mp, Kp) != (M, K):
        x2 = jnp.pad(x2, ((0, Mp - M), (0, Kp - K)))
    w = weight
    if (Np, Kp) != (N, K):
        w = jnp.pad(w, ((0, Np - N), (0, Kp - K)))

    w_spec_kwargs = {}
    if weight_buffers != 2:
        w_spec_kwargs["pipeline_mode"] = pl.Buffered(weight_buffers)

    args = [x2, w]
    in_specs = [
        pl.BlockSpec((tm, tk), lambda i, j, k: (i, k)),                 # X tile
        pl.BlockSpec((tn, tk), lambda i, j, k: (j, k), **w_spec_kwargs),  # W tile
    ]
    if has_bias:
        b2 = bias.astype(jnp.float32).reshape(1, N)
        if Np != N:
            b2 = jnp.pad(b2, ((0, 0), (0, Np - N)))
        args.append(b2)
        in_specs.append(pl.BlockSpec((1, tn), lambda i, j, k: (0, j)))  # bias tile

    out_spec = pl.BlockSpec((tm, tn), lambda i, j, k: (i, j))
    scratch_shapes = [pltpu.VMEM((tm, tn), jnp.float32)] if use_scratch else []

    grid_m, grid_n, grid_k = Mp // tm, Np // tn, Kp // tk
    grid = (grid_m, grid_n, grid_k)   # K (reduction) axis last

    # Truthful bytes: X is re-streamed per N tile, W per M tile.
    cost = pl.CostEstimate(
        flops=2 * M * N * K,
        transcendentals=0,
        bytes_accessed=(grid_n * Mp * Kp * x_item
                        + grid_m * Np * Kp * w_item
                        + Mp * Np * out_item
                        + (Np * 4 if has_bias else 0)),
    )

    vmem_limit = int(min(max(2 * vmem_est(tm, tn, tk), 32 << 20), 48 << 20))

    kernel = _make_kernel(has_bias, use_scratch, compute_dtype)

    out = pl.pallas_call(
        kernel,
        out_shape=jax.ShapeDtypeStruct((Mp, Np), out_dtype),
        grid_spec=pltpu.PrefetchScalarGridSpec(
            num_scalar_prefetch=0,
            grid=grid,
            in_specs=in_specs,
            out_specs=out_spec,
            scratch_shapes=scratch_shapes,
        ),
        compiler_params=pltpu.CompilerParams(
            dimension_semantics=("parallel", "parallel", "arbitrary"),
            vmem_limit_bytes=vmem_limit,
        ),
        cost_estimate=cost,
    )(*args)

    if (Mp, Np) != (M, N):
        out = out[:M, :N]
    return out.reshape(*lead, N)


if __name__ == "__main__":
    # Small shapes consistent with the module: a linear over the last dim.
    batch, seq = 2, 8
    in_features, out_features = 256, 128
    world_size = 2  # emulated tensor-parallel group size

    key = jax.random.PRNGKey(0)
    kx, kw, kb, kx3, kw3 = jax.random.split(key, 5)
    x = jax.random.normal(kx, (batch, seq, in_features), dtype=jnp.float32)
    # nn.Linear parameter shapes: weight (out, in), bias (out,)
    weight = jax.random.normal(kw, (out_features, in_features), dtype=jnp.float32) * 0.02
    bias = jax.random.normal(kb, (out_features,), dtype=jnp.float32) * 0.01

    # 1) f32 with bias: direct accumulation into the resident f32 output tile.
    y = jax.block_until_ready(row_parallel_linear(x, weight, bias, world_size=world_size))
    y_ref = jnp.einsum("bsk,nk->bsn", x, weight) + bias
    assert y.shape == (batch, seq, out_features)
    np.testing.assert_allclose(np.asarray(y), np.asarray(y_ref), rtol=1e-5, atol=1e-5)

    # 2) bf16 in/out: f32 scratch accumulator, single epilogue cast.
    xb, wb, bb = (x.astype(jnp.bfloat16), weight.astype(jnp.bfloat16),
                  bias.astype(jnp.bfloat16))
    yb = jax.block_until_ready(row_parallel_linear(xb, wb, bb, world_size=world_size))
    yb_ref = (jnp.einsum("bsk,nk->bsn", xb.astype(jnp.float32),
                         wb.astype(jnp.float32)) + bb.astype(jnp.float32))
    np.testing.assert_allclose(np.asarray(yb, dtype=np.float32), np.asarray(yb_ref),
                               rtol=2e-2, atol=2e-2)

    # 3) no-bias + unaligned N/K: exercises the bias-free kernel variant and the
    #    alignment-only padding path (K=192 -> 256, N=96 -> 128).
    x3 = jax.random.normal(kx3, (batch, seq, 192), dtype=jnp.float32)
    w3 = jax.random.normal(kw3, (96, 192), dtype=jnp.float32) * 0.02
    y3 = jax.block_until_ready(row_parallel_linear(x3, w3, None, world_size=world_size))
    y3_ref = jnp.einsum("bsk,nk->bsn", x3, w3)
    assert y3.shape == (batch, seq, 96)
    np.testing.assert_allclose(np.asarray(y3), np.asarray(y3_ref), rtol=1e-5, atol=1e-5)

    print("KERNEL_OK")
</pallas_src>

<mosaic_0001>
module attributes {stable_mosaic.version = 11 : i64} {
  func.func @kernel(%arg0: i32, %arg1: i32, %arg2: i32, %arg3: memref<16x256xf32, #tpu.memory_space<vmem>>, %arg4: memref<128x256xf32, #tpu.memory_space<vmem>>, %arg5: memref<1x128xf32, #tpu.memory_space<vmem>>, %arg6: memref<16x128xf32, #tpu.memory_space<vmem>>) attributes {dimension_semantics = [#tpu.dimension_semantics<parallel>, #tpu.dimension_semantics<parallel>, #tpu.dimension_semantics<arbitrary>], iteration_bounds = array<i64: 1, 1, 1>, scalar_prefetch = 0 : i64, scratch_operands = 0 : i64, tpu.core_type = #tpu.core_type<tc>, window_params = [{transform_indices = @transform_0, window_bounds = array<i64: 16, 256>}, {transform_indices = @transform_1, window_bounds = array<i64: 128, 256>}, {transform_indices = @transform_2, window_bounds = array<i64: 1, 128>}, {transform_indices = @transform_3, window_bounds = array<i64: 16, 128>}]} {
    %c0_i32 = arith.constant 0 : i32
    %0 = arith.cmpi eq, %arg2, %c0_i32 : i32
    %1 = arith.extui %0 : i1 to i32
    %c0_i32_0 = arith.constant 0 : i32
    %2 = arith.cmpi ne, %1, %c0_i32_0 : i32
    scf.if %2 {
      %cst_10 = arith.constant 0.000000e+00 : f32
      %12 = vector.broadcast %cst_10 : f32 to vector<16x128xf32>
      %c0_11 = arith.constant 0 : index
      %c0_12 = arith.constant 0 : index
      %13 = vector.load %arg6[%c0_11, %c0_12] : memref<16x128xf32, #tpu.memory_space<vmem>>, vector<16x128xf32>
      tpu.vector_store %arg6[%c0_11, %c0_12], %12 {strides = array<i32>} : memref<16x128xf32, #tpu.memory_space<vmem>>, vector<16x128xf32>,
    } else {
    }
    %c0 = arith.constant 0 : index
    %c0_1 = arith.constant 0 : index
    %3 = vector.load %arg3[%c0, %c0_1] : memref<16x256xf32, #tpu.memory_space<vmem>>, vector<16x256xf32>
    %c0_2 = arith.constant 0 : index
    %c0_3 = arith.constant 0 : index
    %4 = vector.load %arg4[%c0_2, %c0_3] : memref<128x256xf32, #tpu.memory_space<vmem>>, vector<128x256xf32>
    %c0_4 = arith.constant 0 : index
    %c0_5 = arith.constant 0 : index
    %5 = vector.load %arg6[%c0_4, %c0_5] : memref<16x128xf32, #tpu.memory_space<vmem>>, vector<16x128xf32>
    %cst = arith.constant dense<0.000000e+00> : vector<16x128xf32>
    %6 = tpu.matmul %3, %4, %cst {dimension_numbers = #tpu.dot_dimension_numbers<[1], [1], [0], [0], [0, 0, 1, 0], [], []>} : vector<16x256xf32>, vector<128x256xf32>, vector<16x128xf32> -> vector<16x128xf32>
    %7 = arith.addf %5, %6 : vector<16x128xf32>
    %c0_6 = arith.constant 0 : index
    %c0_7 = arith.constant 0 : index
    %8 = vector.load %arg6[%c0_6, %c0_7] : memref<16x128xf32, #tpu.memory_space<vmem>>, vector<16x128xf32>
    tpu.vector_store %arg6[%c0_6, %c0_7], %7 {strides = array<i32>} : memref<16x128xf32, #tpu.memory_space<vmem>>, vector<16x128xf32>,
    %c0_i32_8 = arith.constant 0 : i32
    %9 = arith.cmpi eq, %arg2, %c0_i32_8 : i32
    %10 = arith.extui %9 : i1 to i32
    %c0_i32_9 = arith.constant 0 : i32
    %11 = arith.cmpi ne, %10, %c0_i32_9 : i32
    scf.if %11 {
      %c0_10 = arith.constant 0 : index
      %c0_11 = arith.constant 0 : index
      %12 = vector.load %arg6[%c0_10, %c0_11] : memref<16x128xf32, #tpu.memory_space<vmem>>, vector<16x128xf32>
      %c0_12 = arith.constant 0 : index
      %c0_13 = arith.constant 0 : index
      %13 = vector.load %arg5[%c0_12, %c0_13] : memref<1x128xf32, #tpu.memory_space<vmem>>, vector<1x128xf32>
      %14 = vector.broadcast %13 : vector<1x128xf32> to vector<16x128xf32>
      %15 = arith.addf %12, %14 : vector<16x128xf32>
      %c0_14 = arith.constant 0 : index
      %c0_15 = arith.constant 0 : index
      %16 = vector.load %arg6[%c0_14, %c0_15] : memref<16x128xf32, #tpu.memory_space<vmem>>, vector<16x128xf32>
      tpu.vector_store %arg6[%c0_14, %c0_15], %15 {strides = array<i32>} : memref<16x128xf32, #tpu.memory_space<vmem>>, vector<16x128xf32>,
    } else {
    }
    return
  }
  func.func @transform_0(%arg0: i32, %arg1: i32, %arg2: i32) -> (i32, i32) {
    %c0_i32 = arith.constant 0 : i32
    return %arg0, %arg2 : i32, i32
  }
  func.func @transform_1(%arg0: i32, %arg1: i32, %arg2: i32) -> (i32, i32) {
    %c0_i32 = arith.constant 0 : i32
    return %arg1, %arg2 : i32, i32
  }
  func.func @transform_2(%arg0: i32, %arg1: i32, %arg2: i32) -> (i32, i32) {
    %c0_i32 = arith.constant 0 : i32
    %c0_i32_0 = arith.constant 0 : i32
    return %c0_i32, %arg1 : i32, i32
  }
  func.func @transform_3(%arg0: i32, %arg1: i32, %arg2: i32) -> (i32, i32) {
    %c0_i32 = arith.constant 0 : i32
    return %arg0, %arg1 : i32, i32
  }
}

</mosaic_0001>

<bundles_post_ra>
// kernel: tpu_custom_call.1
= control target key start
LH: loop header
LB: loop body
LE: loop exit
PB: predicated region body
PF: predicated region fallthrough
CT: control target
= control target key end

     0   :  { %8 = vsyncpa [#allocation3], 0  ;;  %s346_s0 = inlined_call_operand.hbm [shape: f32[16,256], index: 0, kind: input, shape index: {}]   ;;  %s347_s1 = inlined_call_operand.hbm [shape: f32[128,256], index: 1, kind: input, shape index: {}]   ;;  %s348_s2 = inlined_call_operand.vmem [shape: f32[1,128], index: 2, kind: input, shape index: {}]   ;;  %s349_s3 = inlined_call_operand.hbm [shape: f32[16,128], index: 3, kind: output, shape index: {}]  }
   0x1   :  { %9 = vsyncpa [#allocation6], 0 }
   0x2   :  { %10 = vsyncpa [#allocation4], 0  ;;  %s307_s12 = smov [#allocation2]  }
   0x3   :  { %s16_s13 = sshll.u32 %s307_s12, 4  ;;  %s17_s13 = int_to_ptr.vmem [resolvable:$true] %s16_s13 }
   0x4   :  { %s249_s14 = scalar_lea.vmem %s17_s13, 512  ;;  %p254_p1 = scmp.lt.s32.totalorder %s17_s13, %s17_s13 }
   0x5   :  { %p250_p0 = scmp.ne.s32.totalorder %s17_s13, %s249_s14  ;;  %p255_p2 = scmp.lt.s32.totalorder %s249_s14, %s249_s14 }
   0x7   :  { %p256_p3 = por %p255_p2, %p254_p1 }
   0x9   :  { %p257_p4 = pnand %p256_p3, %p250_p0 }
   0xb   :  { %260 = shalt.err (!%p257_p4)
}
   0xc   :  { %s308_s15 = smov 256   ;;  %s309_s16 = smov 16  }
   0xd   :  { %22 = dma.hbm_to_vmem [thread:$0]  %s346_s0, 512, %s17_s13, [#allocation3], %s308_s15, %s308_s15, %s309_s16  }
   0xe   :  { %s310_s19 = smov [#allocation5]  }
   0xf   :  { %s28_s20 = sshll.u32 %s310_s19, 4  ;;  %s29_s20 = int_to_ptr.vmem [resolvable:$true] %s28_s20 }
  0x10   :  { %s269_s21 = scalar_lea.vmem %s29_s20, 4096  ;;  %p274_p6 = scmp.lt.s32.totalorder %s29_s20, %s29_s20 }
  0x11   :  { %p270_p5 = scmp.ne.s32.totalorder %s29_s20, %s269_s21  ;;  %p275_p7 = scmp.lt.s32.totalorder %s269_s21, %s269_s21 }
  0x13   :  { %p276_p8 = por %p275_p7, %p274_p6 }
  0x15   :  { %p277_p9 = pnand %p276_p8, %p270_p5 }
  0x17   :  { %280 = shalt.err (!%p277_p9)
}
  0x18   :  { %34 = dma.hbm_to_vmem [thread:$0]  %s347_s1, 4096, %s29_s20, [#allocation6], %s308_s15, %s308_s15, %s309_s16  }
  0x19   :  { %301 = dma.done.wait [#allocation3], 512  }
  0x1a   :  { %302 = vsyncadd [#allocation3], 4294966784 }
  0x1b   :  { %303 = dma.done.wait [#allocation6], 4096  }
  0x1c   :  { %304 = vsyncadd [#allocation6], 4294963200  ;;  %v84_v0 = vld [vmem:[#allocation5 + $0xf8] sm:$0xff]  ;;  %v83_v1 = vld [vmem:[#allocation5 + $0xf0] sm:$0xff]  ;;  %s311_s0 = smov [#allocation7]  }
  0x1d   :  { %v82_v2 = vld [vmem:[#allocation5 + $0xe8] sm:$0xff]  ;;  %87 = vmatprep.subr.mxu0 %v84_v0  ;;  %201 = vmatprep.subr.mxu1 %v84_v0  ;;  %v81_v3 = vld [vmem:[#allocation5 + $0xe0] sm:$0xff]  ;;  %v80_v4 = vld [vmem:[#allocation5 + $0xd8] sm:$0xff]  ;;  %s187_s1 = sshll.u32 %s311_s0, 4  ;;  %s188_s1 = int_to_ptr.vmem [resolvable:$true] %s187_s1 }
  0x1e   :  { %88 = vmatpush1.xpose.msra.mxu0 %v83_v1  ;;  %217 = vmatpush1.xpose.msra.mxu1 %v83_v1  ;;  %v79_v5 = vld [vmem:[#allocation5 + $0xd0] sm:$0xff]  ;;  %v78_v6 = vld [vmem:[#allocation5 + $0xc8] sm:$0xff]  ;;  %v77_v8 = vld [vmem:[#allocation5 + $0xc0] sm:$0xff]  ;;  %s281_s26 = scalar_lea.vmem %s188_s1, 256  ;;  %p286_p11 = scmp.lt.s32.totalorder %s188_s1, %s188_s1 }
  0x1f   :  { %89 = vmatprep.subr.mxu0 %v82_v2  ;;  %202 = vmatprep.subr.mxu1 %v82_v2  ;;  %v50_v7 = vld [vmem:[#allocation2 + $0x8] sm:$0xff]  ;;  %v52_v9 = vld [vmem:[#allocation2 + $0x18] sm:$0xff]  ;;  %v75_v11 = vld [vmem:[#allocation5 + $0xb0] sm:$0xff]  ;;  %p282_p10 = scmp.ne.s32.totalorder %s188_s1, %s281_s26  ;;  %p287_p12 = scmp.lt.s32.totalorder %s281_s26, %s281_s26 }
  0x20   :  { %v76_v10 = vld [vmem:[#allocation5 + $0xb8] sm:$0xff]  ;;  %151 = vmatprep.mubr.f32.mxu0 %v50_v7  ;;  %156 = vmatprep.mubr.f32.mxu1 %v52_v9  ;;  %v74_v12 = vld [vmem:[#allocation5 + $0xa8] sm:$0xff]  ;;  %v73_v13 = vld [vmem:[#allocation5 + $0xa0] sm:$0xff] }
  0x21   :  { %v72_v14 = vld [vmem:[#allocation5 + $0x98] sm:$0xff]  ;;  %v71_v15 = vld [vmem:[#allocation5 + $0x90] sm:$0xff]  ;;  %v70_v16 = vld [vmem:[#allocation5 + $0x88] sm:$0xff]  ;;  %p288_p13 = por %p287_p12, %p286_p11 }
  0x22   :  { %90 = vmatpush1.xpose.msra.mxu0 %v81_v3  ;;  %218 = vmatpush1.xpose.msra.mxu1 %v81_v3  ;;  %v69_v17 = vld [vmem:[#allocation5 + $0x80] sm:$0xff]  ;;  %v68_v18 = vld [vmem:[#allocation5 + $0x78] sm:$0xff]  ;;  %v67_v19 = vld [vmem:[#allocation5 + $0x70] sm:$0xff] }
  0x23   :  { %91 = vmatprep.subr.mxu0 %v80_v4  ;;  %203 = vmatprep.subr.mxu1 %v80_v4  ;;  %v66_v20 = vld [vmem:[#allocation5 + $0x68] sm:$0xff]  ;;  %v65_v21 = vld [vmem:[#allocation5 + $0x60] sm:$0xff]  ;;  %v64_v22 = vld [vmem:[#allocation5 + $0x58] sm:$0xff]  ;;  %p289_p0 = pnand %p288_p13, %p282_p10 }
  0x24   :  { %v63_v23 = vld [vmem:[#allocation5 + $0x50] sm:$0xff]  ;;  %v62_v24 = vld [vmem:[#allocation5 + $0x48] sm:$0xff]  ;;  %v61_v25 = vld [vmem:[#allocation5 + $0x40] sm:$0xff] }
  0x25   :  { %v60_v26 = vld [vmem:[#allocation5 + $0x38] sm:$0xff]  ;;  %v59_v27 = vld [vmem:[#allocation5 + $0x30] sm:$0xff]  ;;  %v58_v28 = vld [vmem:[#allocation5 + $0x28] sm:$0xff] }
  0x26   :  { %92 = vmatpush1.xpose.msra.mxu0 %v79_v5  ;;  %219 = vmatpush1.xpose.msra.mxu1 %v79_v5  ;;  %v57_v29 = vld [vmem:[#allocation5 + $0x20] sm:$0xff]  ;;  %v56_v30 = vld [vmem:[#allocation5 + $0x18] sm:$0xff]  ;;  %v55_v31 = vld [vmem:[#allocation5 + $0x10] sm:$0xff] }
  0x27   :  { %93 = vmatprep.subr.mxu0 %v78_v6  ;;  %204 = vmatprep.subr.mxu1 %v78_v6  ;;  %v54_v32 = vld [vmem:[#allocation5 + $0x8] sm:$0xff]  ;;  %v53_v33 = vld [vmem:[#allocation5] sm:$0xff]  ;;  %v51_v35 = vld [vmem:[#allocation2 + $0x10] sm:$0xff] }
  0x28   :  { %v49_v34 = vld [vmem:[#allocation2] sm:$0xff] }
  0x29   :  { %v200_v38 = vld [vmem:[%s348_s2] ss:$0 sm:$0xff] }
  0x2a   :  { %94 = vmatpush1.xpose.msra.mxu0 %v77_v8  ;;  %220 = vmatpush1.xpose.msra.mxu1 %v77_v8 }
  0x2b   :  { %95 = vmatprep.subr.mxu0 %v76_v10  ;;  %205 = vmatprep.subr.mxu1 %v76_v10 }
  0x2e   :  { %96 = vmatpush1.xpose.msra.mxu0 %v75_v11  ;;  %221 = vmatpush1.xpose.msra.mxu1 %v75_v11 }
  0x2f   :  { %97 = vmatprep.subr.mxu0 %v74_v12  ;;  %206 = vmatprep.subr.mxu1 %v74_v12 }
  0x32   :  { %98 = vmatpush1.xpose.msra.mxu0 %v73_v13  ;;  %222 = vmatpush1.xpose.msra.mxu1 %v73_v13 }
  0x33   :  { %99 = vmatprep.subr.mxu0 %v72_v14  ;;  %207 = vmatprep.subr.mxu1 %v72_v14 }
  0x36   :  { %100 = vmatpush1.xpose.msra.mxu0 %v71_v15  ;;  %223 = vmatpush1.xpose.msra.mxu1 %v71_v15 }
  0x37   :  { %101 = vmatprep.subr.mxu0 %v70_v16  ;;  %208 = vmatprep.subr.mxu1 %v70_v16 }
  0x3a   :  { %102 = vmatpush1.xpose.msra.mxu0 %v69_v17  ;;  %224 = vmatpush1.xpose.msra.mxu1 %v69_v17 }
  0x3b   :  { %103 = vmatprep.subr.mxu0 %v68_v18  ;;  %209 = vmatprep.subr.mxu1 %v68_v18 }
  0x3e   :  { %104 = vmatpush1.xpose.msra.mxu0 %v67_v19  ;;  %225 = vmatpush1.xpose.msra.mxu1 %v67_v19 }
  0x3f   :  { %105 = vmatprep.subr.mxu0 %v66_v20  ;;  %210 = vmatprep.subr.mxu1 %v66_v20 }
  0x42   :  { %106 = vmatpush1.xpose.msra.mxu0 %v65_v21  ;;  %226 = vmatpush1.xpose.msra.mxu1 %v65_v21 }
  0x43   :  { %107 = vmatprep.subr.mxu0 %v64_v22  ;;  %211 = vmatprep.subr.mxu1 %v64_v22 }
  0x46   :  { %108 = vmatpush1.xpose.msra.mxu0 %v63_v23  ;;  %227 = vmatpush1.xpose.msra.mxu1 %v63_v23 }
  0x47   :  { %109 = vmatprep.subr.mxu0 %v62_v24  ;;  %212 = vmatprep.subr.mxu1 %v62_v24 }
  0x4a   :  { %110 = vmatpush1.xpose.msra.mxu0 %v61_v25  ;;  %228 = vmatpush1.xpose.msra.mxu1 %v61_v25 }
  0x4b   :  { %111 = vmatprep.subr.mxu0 %v60_v26  ;;  %213 = vmatprep.subr.mxu1 %v60_v26 }
  0x4e   :  { %112 = vmatpush1.xpose.msra.mxu0 %v59_v27  ;;  %229 = vmatpush1.xpose.msra.mxu1 %v59_v27 }
  0x4f   :  { %113 = vmatprep.subr.mxu0 %v58_v28  ;;  %214 = vmatprep.subr.mxu1 %v58_v28 }
  0x52   :  { %114 = vmatpush1.xpose.msra.mxu0 %v57_v29  ;;  %230 = vmatpush1.xpose.msra.mxu1 %v57_v29 }
  0x53   :  { %115 = vmatprep.subr.mxu0 %v56_v30  ;;  %215 = vmatprep.subr.mxu1 %v56_v30 }
  0x56   :  { %116 = vmatpush1.xpose.msra.mxu0 %v55_v31  ;;  %231 = vmatpush1.xpose.msra.mxu1 %v55_v31 }
  0x57   :  { %117 = vmatprep.subr.mxu0 %v54_v32  ;;  %216 = vmatprep.subr.mxu1 %v54_v32 }
  0x5a   :  { %118 = vmatpush1.xpose.msra.mxu0 %v53_v33  ;;  %232 = vmatpush1.xpose.msra.mxu1 %v53_v33 }
  0x5d   :  { %152 = vmatmul.mubr.f32.vlgmr.msra.gmra.mxu0 %v49_v34  ;;  %157 = vmatmul.mubr.f32.vlgmr.msra.gmra.mxu1 %v51_v35 }
 0x11d   :  { %v153_v36 = vpop.f32.mrf.mxu0  ;;  %v158_v37 = vpop.f32.mrf.mxu1 }
 0x11e   :  { %v178_v41 = vadd.f32 %v200_v38, %v153_v36  ;;  %v179_v42 = vadd.f32 %v200_v38, %v158_v37 }
 0x11f   :  { %v155_v39 = vpop.f32.mrf.mxu0  ;;  %v160_v40 = vpop.f32.mrf.mxu1 }
 0x120   :  { %180 = vst [vmem:[#allocation7] sm:$0xff] %v178_v41  ;;  %181 = vst [vmem:[#allocation7 + $0x8] sm:$0xff] %v179_v42 }
 0x121   :  { %292 = shalt.err (!%p289_p0)
}
 0x122   :  { %s312_s27 = smov 128   ;;  %s313_s28 = smov 8  }
 0x123   :  { %193 = dma.vmem_to_hbm [thread:$0]  %s188_s1, 256, %s349_s3, [#allocation4], %s312_s27, %s312_s27, %s313_s28  }
 0x124   :  { %305 = dma.done.wait [#allocation4], 256  }
 0x125   :  { %306 = vsyncadd [#allocation4], 4294967040 }
 0x126   :  { %197 = vsyncpa [#allocation3], 1 }
 0x127   :  { %198 = vsyncpa [#allocation6], 1 }
 0x128   :  { %199 = vsyncpa [#allocation4], 1 }

</bundles_post_ra>
